<compile_context>
chip_gen: v7x
topology: tpu7x:2x2x1
jax: 0.10.0
libtpu: 0.0.40
codegen_flags: <defaults>
</compile_context>

<pallas_src>
import functools

import jax
import jax.numpy as jnp
from jax.experimental import pallas as pl
from jax.experimental.pallas import tpu as pltpu


_LANE = 128
_SUBLANE = 8
# Caps the (tile_n, 1) column accumulators (lane-padded to 128) at ~0.5 MiB each.
_MAX_TILE_ROWS = 1024


def _tpu_vmem_capacity_bytes():
    try:
        info = pltpu.get_tpu_info()
        cap = getattr(info, "vmem_capacity_bytes", None)
        if cap:
            return int(cap)
    except Exception:
        pass
    return 128 * 1024 * 1024  # v5e / v6e physical VMEM (conservative default)


def _default_num_splits():
    # One partial-sum "split" per TensorCore. On 1-TC chips (v5e / v6e) the
    # split axis is just a serial loop, so default to 1 there.
    try:
        info = pltpu.get_tpu_info()
        for attr in ("num_tensorcores", "tensorcore_count", "num_cores",
                     "cores_per_chip"):
            n = getattr(info, attr, None)
            if n:
                return max(1, min(int(n), 2))
    except Exception:
        pass
    return 1


def _vmem_limit_bytes(vmem_cap):
    # v7x has only 64 MiB physical VMEM per TensorCore: keep the scoped limit
    # well under it. On 128 MiB chips (v5e / v6e) allow a larger limit so the
    # pipeline can use longer contiguous DMAs.
    if vmem_cap <= 64 * 1024 * 1024:
        return 48 * 1024 * 1024
    return 64 * 1024 * 1024


def _pick_tile_n(n_rows, vocab, itemsize, vmem_limit):
    """Largest row tile (multiple of 8) whose *working set* fits the budget.

    Per logits element the kernel needs roughly:
      2 * itemsize bytes  -- double-buffered input tile (Pallas pipeline)
      ~12 bytes           -- f32 upcast / exp output / iota-select temporaries
    Budget = half the scoped VMEM limit; the other half is headroom for the
    column accumulators, the target tile and compiler scratch.
    """
    per_elem = 2 * itemsize + 12
    budget = vmem_limit // 2
    t = budget // (vocab * per_elem)
    t = int(max(_SUBLANE, min(t, _MAX_TILE_ROWS)))
    t = (t // _SUBLANE) * _SUBLANE
    if t >= n_rows:
        return n_rows  # single full block (full-dim block is always legal)
    return t


# ---------------------------------------------------------------------------
# Masked cross-entropy partial sums (CrossEntropyLoss(ignore_index=pad_idx)).
#   For each row: nll = logsumexp(logits) - logits[target]
#   Per split c:  sum_c = sum(nll * valid), cnt_c = sum(valid)
#   valid = (row in range) & (target != pad_idx)
# ---------------------------------------------------------------------------
def _ce_kernel(tgt_ref, pred_ref, sum_ref, cnt_ref, acc_sum, acc_cnt,
               *, pad_idx, n_rows, tile_n, steps):
    c = pl.program_id(0)          # split (TensorCore on multi-TC chips)
    i = pl.program_id(1)          # reduction step within the split

    @pl.when(i == 0)
    def _():
        acc_sum[...] = jnp.zeros_like(acc_sum)
        acc_cnt[...] = jnp.zeros_like(acc_cnt)

    x = pred_ref[...]                                    # (tile_n, V) native dtype
    tgt = tgt_ref[...]                                   # (tile_n, 1) int32

    # Pass 1 over the tile (native dtype): row max + target-logit gather.
    # Both are exact in bf16 (max picks an existing value; the masked sum has
    # exactly one nonzero per row), so no f32 copy of the tile is needed.
    m = jnp.max(x, axis=-1, keepdims=True).astype(jnp.float32)       # (tile_n, 1)
    lane = jax.lax.broadcasted_iota(jnp.int32, x.shape, 1)
    tgt_logit = jnp.sum(jnp.where(lane == tgt, x, jnp.zeros([], x.dtype)),
                        axis=-1, keepdims=True).astype(jnp.float32)  # (tile_n, 1)

    # Pass 2: exp-sum in f32; the upcast lives only inside this expression.
    # TODO(synk): if a bundle dump shows the XLU reduce slot saturated (likely
    # bf16 input on v7x), offload this row-sum to the idle MXU via a ones-matmul.
    ex_sum = jnp.sum(jnp.exp(x.astype(jnp.float32) - m), axis=-1, keepdims=True)
    lse = jnp.log(ex_sum) + m
    nll = lse - tgt_logit                                  # (tile_n, 1) f32

    # Global row index masks (a) rows past N in the edge block and
    # (b) duplicated blocks from the clamped index_map.
    row = jax.lax.broadcasted_iota(jnp.int32, tgt.shape, 0)     # (tile_n, 1)
    global_row = (c * steps + i) * tile_n + row
    valid = jnp.logical_and(global_row < n_rows, tgt != pad_idx)

    # Per-row partial accumulation (select, not multiply, so garbage / -inf
    # rows cannot poison the sum). Cross-sublane reduce deferred to epilogue.
    acc_sum[...] += jnp.where(valid, nll, 0.0)
    acc_cnt[...] += valid.astype(jnp.float32)

    @pl.when(i == pl.num_programs(1) - 1)
    def _():
        sum_ref[...] = jnp.zeros_like(sum_ref) + jnp.sum(acc_sum[...])
        cnt_ref[...] = jnp.zeros_like(cnt_ref) + jnp.sum(acc_cnt[...])


def masked_ce_sums(pred_2d, tgt_2d, pad_idx, *, num_splits=None, tile_n=None):
    """Returns (sum of nll over valid rows, number of valid rows)."""
    N, V = pred_2d.shape
    itemsize = jnp.dtype(pred_2d.dtype).itemsize
    vmem_limit = _vmem_limit_bytes(_tpu_vmem_capacity_bytes())
    if tile_n is None:
        tile_n = _pick_tile_n(N, V, itemsize, vmem_limit)
    if num_splits is None:
        num_splits = _default_num_splits()

    blocks_total = -(-N // tile_n)
    num_splits = max(1, min(int(num_splits), blocks_total))
    steps = -(-blocks_total // num_splits)
    last_block = blocks_total - 1

    def row_map(c, i):
        # Clamp so the DMA never walks past the last real block; the kernel's
        # global_row mask zeroes the duplicated work.
        return (jnp.minimum(c * steps + i, last_block), 0)

    kernel = functools.partial(_ce_kernel, pad_idx=pad_idx, n_rows=N,
                               tile_n=tile_n, steps=steps)

    cost = pl.CostEstimate(
        flops=6 * N * V,
        transcendentals=N * V,
        bytes_accessed=N * V * itemsize + N * 4
        + 2 * num_splits * _SUBLANE * _LANE * 4,
    )

    sum_out, cnt_out = pl.pallas_call(
        kernel,
        out_shape=(
            jax.ShapeDtypeStruct((num_splits * _SUBLANE, _LANE), jnp.float32),
            jax.ShapeDtypeStruct((num_splits * _SUBLANE, _LANE), jnp.float32),
        ),
        grid_spec=pltpu.PrefetchScalarGridSpec(
            num_scalar_prefetch=0,
            grid=(num_splits, steps),
            in_specs=[
                pl.BlockSpec((tile_n, 1), row_map),
                pl.BlockSpec((tile_n, V), row_map),
            ],
            out_specs=(
                pl.BlockSpec((_SUBLANE, _LANE), lambda c, i: (c, 0)),
                pl.BlockSpec((_SUBLANE, _LANE), lambda c, i: (c, 0)),
            ),
            scratch_shapes=[
                pltpu.VMEM((tile_n, 1), jnp.float32),   # per-row nll partials
                pltpu.VMEM((tile_n, 1), jnp.float32),   # per-row count partials
            ],
        ),
        compiler_params=pltpu.CompilerParams(
            # TODO(synk): on v7x, verify both TensorCores are active; if not,
            # switch axis 0 to pltpu.CORE_PARALLEL (or use pl.core_map).
            dimension_semantics=("parallel", "arbitrary"),
            vmem_limit_bytes=vmem_limit,
        ),
        cost_estimate=cost,
    )(tgt_2d, pred_2d)

    # Every element of split c's (8,128) block holds that split's partial sum.
    sums = sum_out[::_SUBLANE, 0]
    cnts = cnt_out[::_SUBLANE, 0]
    return jnp.sum(sums), jnp.sum(cnts)


# ---------------------------------------------------------------------------
# VAE_Loss forward
# ---------------------------------------------------------------------------
def vae_loss(pred, output, latent_mu, latent_logvar, *, beta, pad_idx,
             num_splits=None, cast_pred_to_bf16=False, _ce_tile_n=None):
    """Returns (kld*beta + rec, rec), matching the torch module.

    `pred` may be bf16 (recommended: halves the dominant HBM read; the kernel
    upcasts to f32 for logsumexp).  Set cast_pred_to_bf16=True to cast an f32
    `pred` in the wrapper (changes numerics slightly vs. the f32 reference).
    """
    S, B, V = pred.shape
    sz = S * B
    if cast_pred_to_bf16 and pred.dtype != jnp.bfloat16:
        pred = pred.astype(jnp.bfloat16)
    pred_2d = pred.reshape(sz, V)
    tgt_2d = output.reshape(sz, 1).astype(jnp.int32)

    ce_sum, ce_cnt = masked_ce_sums(pred_2d, tgt_2d, pad_idx,
                                    num_splits=num_splits, tile_n=_ce_tile_n)
    rec = ce_sum / ce_cnt     # NaN if every row is ignored, matching torch

    # KLD: B*L elements -- trivial work, plain JAX (XLA fuses it with the
    # scalar combine; a dedicated pallas_call would be pure launch overhead).
    mu = latent_mu.astype(jnp.float32)
    lv = latent_logvar.astype(jnp.float32)
    kld = -0.5 * jnp.mean(1.0 + lv - mu * mu - jnp.exp(lv))

    return kld * beta + rec, rec


# Pure-JAX reference for sanity checks.
def _vae_loss_ref(pred, output, latent_mu, latent_logvar, *, beta, pad_idx):
    kld = -0.5 * jnp.mean(1.0 + latent_logvar - latent_mu**2 - jnp.exp(latent_logvar))
    S, B, V = pred.shape
    logits = pred.reshape(S * B, V).astype(jnp.float32)
    tgt = output.reshape(S * B).astype(jnp.int32)
    logp = jax.nn.log_softmax(logits, axis=-1)
    nll = -jnp.take_along_axis(logp, tgt[:, None], axis=-1)[:, 0]
    valid = (tgt != pad_idx).astype(jnp.float32)
    rec = jnp.sum(nll * valid) / jnp.sum(valid)
    return kld * beta + rec, rec


if __name__ == "__main__":
    key = jax.random.PRNGKey(0)
    k1, k2, k3, k4, k5, k6 = jax.random.split(key, 6)

    # ---- test 1: standard shapes (single full block) -------------------------
    S, B, V = 8, 2, 128     # seq, batch, vocab
    L = 32                  # latent dim
    beta = 2
    pad_idx = 0

    pred = jax.random.normal(k1, (S, B, V), dtype=jnp.float32)
    output = jax.random.randint(k2, (S, B), 0, V, dtype=jnp.int32)
    output = output.at[0, 0].set(pad_idx).at[3, 1].set(pad_idx)   # pad tokens
    latent_mu = jax.random.normal(k3, (B, L), dtype=jnp.float32)
    latent_logvar = 0.1 * jax.random.normal(k4, (B, L), dtype=jnp.float32)

    total, rec = vae_loss(pred, output, latent_mu, latent_logvar,
                          beta=beta, pad_idx=pad_idx)
    jax.block_until_ready((total, rec))

    total_ref, rec_ref = _vae_loss_ref(pred, output, latent_mu, latent_logvar,
                                       beta=beta, pad_idx=pad_idx)
    assert jnp.allclose(total, total_ref, rtol=1e-5, atol=1e-5), (total, total_ref)
    assert jnp.allclose(rec, rec_ref, rtol=1e-5, atol=1e-5), (rec, rec_ref)

    # ---- test 2: N not divisible by the tile (exercises row masking) ---------
    S2, B2, V2 = 5, 3, 256                      # N = 15, force tile_n = 8
    pred2 = jax.random.normal(k5, (S2, B2, V2), dtype=jnp.float32)
    output2 = jax.random.randint(k6, (S2, B2), 0, V2, dtype=jnp.int32)
    output2 = output2.at[1, 2].set(pad_idx)

    total2, rec2 = vae_loss(pred2, output2, latent_mu, latent_logvar,
                            beta=beta, pad_idx=pad_idx, num_splits=2,
                            _ce_tile_n=8)
    jax.block_until_ready((total2, rec2))

    total2_ref, rec2_ref = _vae_loss_ref(pred2, output2, latent_mu, latent_logvar,
                                         beta=beta, pad_idx=pad_idx)
    assert jnp.allclose(total2, total2_ref, rtol=1e-5, atol=1e-5), (total2, total2_ref)
    assert jnp.allclose(rec2, rec2_ref, rtol=1e-5, atol=1e-5), (rec2, rec2_ref)

    # ---- test 3: bf16 logits path (halved HBM traffic) ------------------------
    pred_bf16 = pred.astype(jnp.bfloat16)
    total3, rec3 = vae_loss(pred_bf16, output, latent_mu, latent_logvar,
                            beta=beta, pad_idx=pad_idx)
    jax.block_until_ready((total3, rec3))
    total3_ref, rec3_ref = _vae_loss_ref(pred_bf16, output, latent_mu,
                                         latent_logvar, beta=beta, pad_idx=pad_idx)
    assert jnp.allclose(total3, total3_ref, rtol=1e-4, atol=1e-4), (total3, total3_ref)
    assert jnp.allclose(rec3, rec3_ref, rtol=1e-4, atol=1e-4), (rec3, rec3_ref)

    print("KERNEL_OK")
</pallas_src>

<mosaic_0001>
module attributes {stable_mosaic.version = 11 : i64} {
  func.func @_ce_kernel(%arg0: i32, %arg1: i32, %arg2: memref<16x1xi32, #tpu.memory_space<vmem>>, %arg3: memref<16x128xf32, #tpu.memory_space<vmem>>, %arg4: memref<8x128xf32, #tpu.memory_space<vmem>>, %arg5: memref<8x128xf32, #tpu.memory_space<vmem>>, %arg6: memref<16x1xf32, #tpu.memory_space<vmem>>, %arg7: memref<16x1xf32, #tpu.memory_space<vmem>>) attributes {dimension_semantics = [#tpu.dimension_semantics<parallel>, #tpu.dimension_semantics<arbitrary>], iteration_bounds = array<i64: 1, 1>, scalar_prefetch = 0 : i64, scratch_operands = 2 : i64, tpu.core_type = #tpu.core_type<tc>, window_params = [{transform_indices = @transform_0, window_bounds = array<i64: 16, 1>}, {transform_indices = @transform_1, window_bounds = array<i64: 16, 128>}, {transform_indices = @transform_2, window_bounds = array<i64: 8, 128>}, {transform_indices = @transform_3, window_bounds = array<i64: 8, 128>}]} {
    %c0_i32 = arith.constant 0 : i32
    %0 = arith.cmpi eq, %arg1, %c0_i32 : i32
    %1 = arith.extui %0 : i1 to i32
    %c0_i32_0 = arith.constant 0 : i32
    %2 = arith.cmpi ne, %1, %c0_i32_0 : i32
    scf.if %2 {
      %cst_20 = arith.constant 0.000000e+00 : f32
      %46 = vector.broadcast %cst_20 : f32 to vector<16x1xf32>
      %c0_21 = arith.constant 0 : index
      %c0_22 = arith.constant 0 : index
      %47 = vector.load %arg6[%c0_21, %c0_22] : memref<16x1xf32, #tpu.memory_space<vmem>>, vector<16x1xf32>
      tpu.vector_store %arg6[%c0_21, %c0_22], %46 {strides = array<i32>} : memref<16x1xf32, #tpu.memory_space<vmem>>, vector<16x1xf32>,
      %cst_23 = arith.constant 0.000000e+00 : f32
      %48 = vector.broadcast %cst_23 : f32 to vector<16x1xf32>
      %c0_24 = arith.constant 0 : index
      %c0_25 = arith.constant 0 : index
      %49 = vector.load %arg7[%c0_24, %c0_25] : memref<16x1xf32, #tpu.memory_space<vmem>>, vector<16x1xf32>
      tpu.vector_store %arg7[%c0_24, %c0_25], %48 {strides = array<i32>} : memref<16x1xf32, #tpu.memory_space<vmem>>, vector<16x1xf32>,
    } else {
    }
    %c0 = arith.constant 0 : index
    %c0_1 = arith.constant 0 : index
    %3 = vector.load %arg3[%c0, %c0_1] : memref<16x128xf32, #tpu.memory_space<vmem>>, vector<16x128xf32>
    %c0_2 = arith.constant 0 : index
    %c0_3 = arith.constant 0 : index
    %4 = vector.load %arg2[%c0_2, %c0_3] : memref<16x1xi32, #tpu.memory_space<vmem>>, vector<16x1xi32>
    %cst = arith.constant dense<0xFF800000> : vector<16xf32>
    %5 = vector.multi_reduction <maximumf>, %3, %cst [1] : vector<16x128xf32> to vector<16xf32>
    %6 = vector.shape_cast %5 : vector<16xf32> to vector<16x1xf32>
    %7 = tpu.iota {dimensions = array<i32: 1>} : vector<16x128xi32>
    %8 = vector.broadcast %4 : vector<16x1xi32> to vector<16x128xi32>
    %9 = arith.cmpi eq, %7, %8 : vector<16x128xi32>
    %cst_4 = arith.constant 0.000000e+00 : f32
    %10 = vector.broadcast %cst_4 : f32 to vector<16x128xf32>
    %11 = arith.select %9, %3, %10 : vector<16x128xi1>, vector<16x128xf32>
    %cst_5 = arith.constant dense<0.000000e+00> : vector<16xf32>
    %12 = vector.multi_reduction <add>, %11, %cst_5 [1] : vector<16x128xf32> to vector<16xf32>
    %13 = vector.shape_cast %12 : vector<16xf32> to vector<16x1xf32>
    %14 = vector.broadcast %6 : vector<16x1xf32> to vector<16x128xf32>
    %15 = arith.subf %3, %14 : vector<16x128xf32>
    %16 = math.exp %15 : vector<16x128xf32>
    %cst_6 = arith.constant dense<0.000000e+00> : vector<16xf32>
    %17 = vector.multi_reduction <add>, %16, %cst_6 [1] : vector<16x128xf32> to vector<16xf32>
    %18 = vector.shape_cast %17 : vector<16xf32> to vector<16x1xf32>
    %19 = math.log %18 : vector<16x1xf32>
    %20 = arith.addf %19, %6 : vector<16x1xf32>
    %21 = arith.subf %20, %13 : vector<16x1xf32>
    %22 = tpu.iota {dimensions = array<i32: 0>} : vector<16x1xi32>
    %c1_i32 = arith.constant 1 : i32
    %23 = arith.muli %arg0, %c1_i32 : i32
    %24 = arith.addi %23, %arg1 : i32
    %c16_i32 = arith.constant 16 : i32
    %25 = arith.muli %24, %c16_i32 : i32
    %26 = vector.broadcast %25 : i32 to vector<16x1xi32>
    %27 = arith.addi %26, %22 : vector<16x1xi32>
    %c16_i32_7 = arith.constant 16 : i32
    %28 = vector.broadcast %c16_i32_7 : i32 to vector<16x1xi32>
    %29 = arith.cmpi slt, %27, %28 : vector<16x1xi32>
    %c0_i32_8 = arith.constant 0 : i32
    %30 = vector.broadcast %c0_i32_8 : i32 to vector<16x1xi32>
    %31 = arith.cmpi ne, %4, %30 : vector<16x1xi32>
    %32 = arith.andi %29, %31 : vector<16x1xi1>
    %c0_9 = arith.constant 0 : index
    %c0_10 = arith.constant 0 : index
    %33 = vector.load %arg6[%c0_9, %c0_10] : memref<16x1xf32, #tpu.memory_space<vmem>>, vector<16x1xf32>
    %cst_11 = arith.constant 0.000000e+00 : f32
    %34 = vector.broadcast %cst_11 : f32 to vector<16x1xf32>
    %35 = arith.select %32, %21, %34 : vector<16x1xi1>, vector<16x1xf32>
    %36 = arith.addf %33, %35 : vector<16x1xf32>
    %c0_12 = arith.constant 0 : index
    %c0_13 = arith.constant 0 : index
    %37 = vector.load %arg6[%c0_12, %c0_13] : memref<16x1xf32, #tpu.memory_space<vmem>>, vector<16x1xf32>
    tpu.vector_store %arg6[%c0_12, %c0_13], %36 {strides = array<i32>} : memref<16x1xf32, #tpu.memory_space<vmem>>, vector<16x1xf32>,
    %c0_14 = arith.constant 0 : index
    %c0_15 = arith.constant 0 : index
    %38 = vector.load %arg7[%c0_14, %c0_15] : memref<16x1xf32, #tpu.memory_space<vmem>>, vector<16x1xf32>
    %39 = arith.extui %32 : vector<16x1xi1> to vector<16x1xi32>
    %40 = arith.sitofp %39 : vector<16x1xi32> to vector<16x1xf32>
    %41 = arith.addf %38, %40 : vector<16x1xf32>
    %c0_16 = arith.constant 0 : index
    %c0_17 = arith.constant 0 : index
    %42 = vector.load %arg7[%c0_16, %c0_17] : memref<16x1xf32, #tpu.memory_space<vmem>>, vector<16x1xf32>
    tpu.vector_store %arg7[%c0_16, %c0_17], %41 {strides = array<i32>} : memref<16x1xf32, #tpu.memory_space<vmem>>, vector<16x1xf32>,
    %c0_i32_18 = arith.constant 0 : i32
    %43 = arith.cmpi eq, %arg1, %c0_i32_18 : i32
    %44 = arith.extui %43 : i1 to i32
    %c0_i32_19 = arith.constant 0 : i32
    %45 = arith.cmpi ne, %44, %c0_i32_19 : i32
    scf.if %45 {
      %cst_20 = arith.constant 0.000000e+00 : f32
      %46 = vector.broadcast %cst_20 : f32 to vector<8x128xf32>
      %c0_21 = arith.constant 0 : index
      %c0_22 = arith.constant 0 : index
      %47 = vector.load %arg6[%c0_21, %c0_22] : memref<16x1xf32, #tpu.memory_space<vmem>>, vector<16x1xf32>
      %48 = vector.shape_cast %47 : vector<16x1xf32> to vector<1x16x1xf32>
      %cst_23 = arith.constant dense<0.000000e+00> : vector<1xf32>
      %49 = vector.multi_reduction <add>, %48, %cst_23 [1, 2] : vector<1x16x1xf32> to vector<1xf32>
      %50 = vector.shape_cast %49 : vector<1xf32> to vector<1x1x1xf32>
      %51 = vector.extract %50[0, 0, 0] : f32 from vector<1x1x1xf32>
      %52 = vector.broadcast %51 : f32 to vector<8x128xf32>
      %53 = arith.addf %46, %52 : vector<8x128xf32>
      %c0_24 = arith.constant 0 : index
      %c0_25 = arith.constant 0 : index
      %54 = vector.load %arg4[%c0_24, %c0_25] : memref<8x128xf32, #tpu.memory_space<vmem>>, vector<8x128xf32>
      tpu.vector_store %arg4[%c0_24, %c0_25], %53 {strides = array<i32>} : memref<8x128xf32, #tpu.memory_space<vmem>>, vector<8x128xf32>,
      %cst_26 = arith.constant 0.000000e+00 : f32
      %55 = vector.broadcast %cst_26 : f32 to vector<8x128xf32>
      %c0_27 = arith.constant 0 : index
      %c0_28 = arith.constant 0 : index
      %56 = vector.load %arg7[%c0_27, %c0_28] : memref<16x1xf32, #tpu.memory_space<vmem>>, vector<16x1xf32>
      %57 = vector.shape_cast %56 : vector<16x1xf32> to vector<1x16x1xf32>
      %cst_29 = arith.constant dense<0.000000e+00> : vector<1xf32>
      %58 = vector.multi_reduction <add>, %57, %cst_29 [1, 2] : vector<1x16x1xf32> to vector<1xf32>
      %59 = vector.shape_cast %58 : vector<1xf32> to vector<1x1x1xf32>
      %60 = vector.extract %59[0, 0, 0] : f32 from vector<1x1x1xf32>
      %61 = vector.broadcast %60 : f32 to vector<8x128xf32>
      %62 = arith.addf %55, %61 : vector<8x128xf32>
      %c0_30 = arith.constant 0 : index
      %c0_31 = arith.constant 0 : index
      %63 = vector.load %arg5[%c0_30, %c0_31] : memref<8x128xf32, #tpu.memory_space<vmem>>, vector<8x128xf32>
      tpu.vector_store %arg5[%c0_30, %c0_31], %62 {strides = array<i32>} : memref<8x128xf32, #tpu.memory_space<vmem>>, vector<8x128xf32>,
    } else {
    }
    return
  }
  func.func @transform_0(%arg0: i32, %arg1: i32) -> (i32, i32) {
    %c1_i32 = arith.constant 1 : i32
    %0 = arith.muli %arg0, %c1_i32 : i32
    %1 = arith.addi %0, %arg1 : i32
    %c0_i32 = arith.constant 0 : i32
    %2 = arith.minsi %1, %c0_i32 : i32
    %c0_i32_0 = arith.constant 0 : i32
    %c0_i32_1 = arith.constant 0 : i32
    return %2, %c0_i32_0 : i32, i32
  }
  func.func @transform_1(%arg0: i32, %arg1: i32) -> (i32, i32) {
    %c1_i32 = arith.constant 1 : i32
    %0 = arith.muli %arg0, %c1_i32 : i32
    %1 = arith.addi %0, %arg1 : i32
    %c0_i32 = arith.constant 0 : i32
    %2 = arith.minsi %1, %c0_i32 : i32
    %c0_i32_0 = arith.constant 0 : i32
    %c0_i32_1 = arith.constant 0 : i32
    return %2, %c0_i32_0 : i32, i32
  }
  func.func @transform_2(%arg0: i32, %arg1: i32) -> (i32, i32) {
    %c0_i32 = arith.constant 0 : i32
    %c0_i32_0 = arith.constant 0 : i32
    return %arg0, %c0_i32 : i32, i32
  }
  func.func @transform_3(%arg0: i32, %arg1: i32) -> (i32, i32) {
    %c0_i32 = arith.constant 0 : i32
    %c0_i32_0 = arith.constant 0 : i32
    return %arg0, %c0_i32 : i32, i32
  }
}

</mosaic_0001>

<bundles_post_ra>
// kernel: tpu_custom_call.1
= control target key start
LH: loop header
LB: loop body
LE: loop exit
PB: predicated region body
PF: predicated region fallthrough
CT: control target
= control target key end

     0   :  { %9 = vsyncpa [#allocation5], 0  ;;  %s430_s0 = inlined_call_operand.hbm [shape: s32[16,1], index: 0, kind: input, shape index: {}]   ;;  %s431_s1 = inlined_call_operand.hbm [shape: f32[16,128], index: 1, kind: input, shape index: {}]   ;;  %s432_s2 = inlined_call_operand.hbm [shape: f32[8,128], index: 2, kind: output, shape index: {0}]   ;;  %s433_s3 = inlined_call_operand.hbm [shape: f32[8,128], index: 3, kind: output, shape index: {1}]  }
   0x1   :  { %10 = vsyncpa [#allocation8], 0 }
   0x2   :  { %11 = vsyncpa [#allocation6], 0 }
   0x3   :  { %12 = vsyncpa [#allocation11], 0  ;;  %s338_s12 = smov [#allocation4]   ;;  %s242_s16 = scalar_lea.hbm %s430_s0, 256 }
   0x4   :  { %s24_s13 = sshll.u32 %s338_s12, 4  ;;  %p243_p0 = scmp.ne.s32.totalorder %s430_s0, %s242_s16  ;;  %s25_s13 = int_to_ptr.vmem [resolvable:$true] %s24_s13 }
   0x5   :  { %p246_p1 = scmp.lt.u32.totalorder %s242_s16, %s430_s0 }
   0x7   :  { %p248_p2 = pnand %p246_p1, %p243_p0 }
   0x9   :  { %251 = shalt.err (!%p248_p2)
}
   0xa   :  { %s252_s21 = scalar_lea.vmem %s25_s13, 256  ;;  %p257_p4 = scmp.lt.s32.totalorder %s25_s13, %s25_s13 }
   0xb   :  { %p253_p3 = scmp.ne.s32.totalorder %s25_s13, %s252_s21  ;;  %p258_p5 = scmp.lt.s32.totalorder %s252_s21, %s252_s21 }
   0xd   :  { %p259_p6 = por %p258_p5, %p257_p4 }
   0xf   :  { %p260_p7 = pnand %p259_p6, %p253_p3 }
  0x11   :  { %263 = shalt.err (!%p260_p7)
}
  0x12   :  { %s339_s22 = smov 128   ;;  %s340_s23 = smov 8  }
  0x13   :  { %30 = dma.hbm_to_vmem [thread:$0]  %s430_s0, 256, %s25_s13, [#allocation5], %s339_s22, %s339_s22, %s340_s23  }
  0x14   :  { %s341_s26 = smov [#allocation7]   ;;  %s264_s30 = scalar_lea.hbm %s431_s1, 256 }
  0x15   :  { %s42_s27 = sshll.u32 %s341_s26, 4  ;;  %p265_p8 = scmp.ne.s32.totalorder %s431_s1, %s264_s30  ;;  %s43_s27 = int_to_ptr.vmem [resolvable:$true] %s42_s27 }
  0x16   :  { %p268_p9 = scmp.lt.u32.totalorder %s264_s30, %s431_s1 }
  0x18   :  { %p270_p10 = pnand %p268_p9, %p265_p8 }
  0x1a   :  { %273 = shalt.err (!%p270_p10)
}
  0x1b   :  { %s274_s8 = scalar_lea.vmem %s43_s27, 256  ;;  %p279_p12 = scmp.lt.s32.totalorder %s43_s27, %s43_s27 }
  0x1c   :  { %p275_p11 = scmp.ne.s32.totalorder %s43_s27, %s274_s8  ;;  %p280_p13 = scmp.lt.s32.totalorder %s274_s8, %s274_s8 }
  0x1e   :  { %p281_p0 = por %p280_p13, %p279_p12 }
  0x20   :  { %p282_p1 = pnand %p281_p0, %p275_p11 }
  0x22   :  { %285 = shalt.err (!%p282_p1)
}
  0x23   :  { %48 = dma.hbm_to_vmem [thread:$0]  %s431_s1, 256, %s43_s27, [#allocation8], %s339_s22, %s339_s22, %s340_s23  }
  0x24   :  { %330 = dma.done.wait [#allocation5], 256  }
  0x25   :  { %331 = vsyncadd [#allocation5], 4294967040 }
  0x26   :  { %332 = dma.done.wait [#allocation8], 256  }
  0x27   :  { %333 = vsyncadd [#allocation8], 4294967040  ;;  %vm67_vm0 = vcmask 7168   ;;  %v342_v0 = vmov 0   ;;  %v343_v1 = vmov 0.0   ;;  %v72_v2 = vld [vmem:[#allocation7] sm:$0xff]  ;;  %v80_v17 = vlaneseq }
  0x28   :  { %232 = vset.pattern.permute.xlu1 %v342_v0  ;;  %70 = vst.msk [vmem:[#allocation3] sm:$0xff] %vm67_vm0, %v343_v1  ;;  %68 = vst.msk [vmem:[#allocation2] sm:$0xff] %vm67_vm0, %v343_v1  ;;  %233 = vset.pattern.permute.xlu0 %v342_v0  ;;  %v74_v3 = vld [vmem:[#allocation4] sm:$0xff]  ;;  %v75_v5 = vld [vmem:[#allocation4 + $0x8] sm:$0xff]  ;;  %s344_s1 = smov [#allocation9]   ;;  %s345_s12 = smov [#allocation10]  }
  0x29   :  { %69 = vst.msk [vmem:[#allocation2 + $0x8] sm:$0xff] %vm67_vm0, %v343_v1  ;;  %71 = vst.msk [vmem:[#allocation3 + $0x8] sm:$0xff] %vm67_vm0, %v343_v1  ;;  %76 = vmax.xlane.f32.xlu0 %v72_v2  ;;  %83 = vperm.xlu1 %232, %v74_v3   ;;  %vm124_vm1 = vcmp.ne.s32.totalorder %v74_v3, 0  ;;  %v73_v7 = vld [vmem:[#allocation7 + $0x8] sm:$0xff]  ;;  %vm125_vm2 = vcmp.ne.s32.totalorder %v75_v5, 0  ;;  %v81_v20 = vand.u32 127, %v80_v17 }
  0x2a   :  { %v218_v8 = vsel %vm124_vm1, 1.0, %v343_v1  ;;  %v219_v10 = vsel %vm125_vm2, 1.0, %v343_v1  ;;  %s190_s10 = sshll.u32 %s344_s1, 4  ;;  %s200_s13 = sshll.u32 %s345_s12, 4  ;;  %s191_s10 = int_to_ptr.vmem [resolvable:$true] %s190_s10  ;;  %s201_s13 = int_to_ptr.vmem [resolvable:$true] %s200_s13 }
  0x2b   :  { %s286_s14 = scalar_lea.vmem %s191_s10, 128  ;;  %p291_p3 = scmp.lt.s32.totalorder %s191_s10, %s191_s10 }
  0x2c   :  { %p287_p2 = scmp.ne.s32.totalorder %s191_s10, %s286_s14  ;;  %p292_p4 = scmp.lt.s32.totalorder %s286_s14, %s286_s14 }
  0x2d   :  { %78 = vmax.xlane.f32.xlu0 %v73_v7  ;;  %86 = vperm.xlu1 %232, %v75_v5  }
  0x2e   :  { %p293_p5 = por %p292_p4, %p291_p3 }
  0x2f   :  { %v137_v4 = vld [vmem:[#allocation3] sm:$0xff]  ;;  %v128_v35 = vld [vmem:[#allocation2] sm:$0xff] }
  0x30   :  { %v138_v6 = vld [vmem:[#allocation3 + $0x8] sm:$0xff]  ;;  %v143_v9 = vadd.f32 %v218_v8, %v137_v4  ;;  %v129_v41 = vld [vmem:[#allocation2 + $0x8] sm:$0xff]  ;;  %p294_p6 = pnand %p293_p5, %p287_p2 }
  0x31   :  { %v144_v11 = vadd.f32 %v219_v10, %v138_v6 }
  0x32   :  { %145 = vst.msk [vmem:[#allocation3] sm:$0xff] %vm67_vm0, %v143_v9 }
  0x33   :  { %146 = vst.msk [vmem:[#allocation3 + $0x8] sm:$0xff] %vm67_vm0, %v144_v11 }
  0x39   :  { %v167_v45 = vld [vmem:[#allocation3] sm:$0xff] }
  0x3a   :  { %v168_v46 = vld [vmem:[#allocation3 + $0x8] sm:$0xff]  ;;  %v169_v50 = vsel %vm67_vm0, %v167_v45, 0.0 }
  0x3b   :  { %v170_v51 = vsel %vm67_vm0, %v168_v46, 0.0 }
  0x3c   :  { %v171_v53 = vadd.f32 %v170_v51, %v169_v50 }
  0xa8   :  { %v84_v19 = vpop.permute.xlu1 %83 }
  0xa9   :  { %vm88_vm3 = vcmp.eq.s32.totalorder %v81_v20, %v84_v19 }
  0xaa   :  { %v90_v23 = vsel %vm88_vm3, %v72_v2, 0.0 }
  0xac   :  { %v87_v22 = vpop.permute.xlu1 %86 }
  0xad   :  { %vm89_vm4 = vcmp.eq.s32.totalorder %v81_v20, %v87_v22 }
  0xae   :  { %v91_v25 = vsel %vm89_vm4, %v73_v7, 0.0 }
  0xb6   :  { %v77_v12 = vpop.xlane.xlu0 %76 }
  0xb7   :  { %v96_v13 = vsub.f32 %v72_v2, %v77_v12 }
  0xb9   :  { %v98_v14 = vmul.f32 1.442695, %v96_v13 }
  0xba   :  { %v79_v15 = vpop.xlane.xlu0 %78 }
  0xbb   :  { %234 = vpow2.f32 %v98_v14  ;;  %v97_v16 = vsub.f32 %v73_v7, %v79_v15 }
  0xbd   :  { %v100_v18 = vmul.f32 1.442695, %v97_v16 }
  0xbf   :  { %236 = vpow2.f32 %v100_v18 }
  0xc5   :  { %v235_v21 = vpop.eup %234 }
  0xc6   :  { %102 = vadd.xlane.f32.xlu0 %v235_v21 }
  0xc9   :  { %v237_v24 = vpop.eup %236 }
  0xca   :  { %104 = vadd.xlane.f32.xlu1 %v237_v24  ;;  %92 = vadd.xlane.f32.xlu0 %v90_v23 }
  0xce   :  { %94 = vadd.xlane.f32.xlu0 %v91_v25 }
 0x153   :  { %v103_v26 = vpop.xlane.xlu0 %102 }
 0x154   :  { %238 = vlog2.f32 %v103_v26 }
 0x157   :  { %v105_v27 = vpop.xlane.xlu1 %104  ;;  %v93_v30 = vpop.xlane.xlu0 %92 }
 0x158   :  { %240 = vlog2.f32 %v105_v27 }
 0x15b   :  { %v95_v39 = vpop.xlane.xlu0 %94 }
 0x15e   :  { %v239_v28 = vpop.eup %238 }
 0x15f   :  { %v107_v29 = vmul.f32 0.6931472, %v239_v28 }
 0x161   :  { %v110_v31 = vadd.f32 %v107_v29, %v77_v12 }
 0x162   :  { %v241_v32 = vpop.eup %240 }
 0x163   :  { %v109_v33 = vmul.f32 0.6931472, %v241_v32  ;;  %v112_v34 = vsub.f32 %v110_v31, %v93_v30 }
 0x165   :  { %v130_v36 = vsel %vm124_vm1, %v112_v34, 0.0  ;;  %v111_v37 = vadd.f32 %v109_v33, %v79_v15 }
 0x166   :  { %v132_v38 = vadd.f32 %v130_v36, %v128_v35 }
 0x167   :  { %v113_v40 = vsub.f32 %v111_v37, %v95_v39 }
 0x168   :  { %135 = vst.msk [vmem:[#allocation2] sm:$0xff] %vm67_vm0, %v132_v38 }
 0x169   :  { %v131_v42 = vsel %vm125_vm2, %v113_v40, 0.0 }
 0x16a   :  { %v133_v43 = vadd.f32 %v131_v42, %v129_v41 }
 0x16c   :  { %136 = vst.msk [vmem:[#allocation2 + $0x8] sm:$0xff] %vm67_vm0, %v133_v43 }
 0x16f   :  { %v150_v44 = vld [vmem:[#allocation2] sm:$0xff] }
 0x170   :  { %v152_v48 = vsel %vm67_vm0, %v150_v44, 0.0 }
 0x173   :  { %v151_v47 = vld [vmem:[#allocation2 + $0x8] sm:$0xff] }
 0x174   :  { %v153_v49 = vsel %vm67_vm0, %v151_v47, 0.0 }
 0x175   :  { %v154_v52 = vadd.f32 %v153_v49, %v152_v48 }
 0x177   :  { %155 = vadd.xlane.f32.xlu0 %v154_v52 }
 0x17b   :  { %172 = vadd.xlane.f32.xlu0 %v171_v53 }
 0x204   :  { %v156_v54 = vpop.xlane.xlu0 %155 }
 0x205   :  { %v157_v55 = vrot.slane %v156_v54, 4 }
 0x207   :  { %v158_v56 = vadd.f32 %v157_v55, %v156_v54 }
 0x208   :  { %v173_v57 = vpop.xlane.xlu0 %172 }
 0x209   :  { %v159_v58 = vrot.slane %v158_v56, 2  ;;  %v174_v59 = vrot.slane %v173_v57, 4 }
 0x20b   :  { %v175_v60 = vadd.f32 %v174_v59, %v173_v57  ;;  %v160_v61 = vadd.f32 %v159_v58, %v158_v56 }
 0x20d   :  { %v176_v62 = vrot.slane %v175_v60, 2  ;;  %v161_v63 = vrot.slane %v160_v61, 1 }
 0x20f   :  { %v177_v0 = vadd.f32 %v176_v62, %v175_v60  ;;  %v162_v1 = vadd.f32 %v161_v63, %v160_v61 }
 0x211   :  { %220 = vpush %v162_v1  ;;  %v178_v2 = vrot.slane %v177_v0, 1 }
 0x213   :  { %v179_v3 = vadd.f32 %v178_v2, %v177_v0 }
 0x215   :  { %222 = vpush %v179_v3 }
 0x242   :  { %s221_s11 = spop %220 }
 0x243   :  { %v164_v4 = vstv %s221_s11 }
 0x244   :  { %166 = vst [vmem:[#allocation9] sm:$0xff] %v164_v4 }
 0x245   :  { %297 = shalt.err (!%p294_p6)
}
 0x246   :  { %s298_s17 = scalar_lea.hbm %s432_s2, 128 }
 0x247   :  { %p299_p7 = scmp.ne.s32.totalorder %s432_s2, %s298_s17  ;;  %p302_p8 = scmp.lt.u32.totalorder %s298_s17, %s432_s2 }
 0x249   :  { %p304_p9 = pnand %p302_p8, %p299_p7 }
 0x24b   :  { %307 = shalt.err (!%p304_p9)
}
 0x24c   :  { %193 = dma.vmem_to_hbm [thread:$0]  %s191_s10, 128, %s432_s2, [#allocation6]  }
 0x24d   :  { %s223_s24 = spop %222  ;;  %s308_s25 = scalar_lea.vmem %s201_s13, 128 }
 0x24e   :  { %v181_v5 = vstv %s223_s24  ;;  %p309_p10 = scmp.ne.s32.totalorder %s201_s13, %s308_s25  ;;  %p313_p11 = scmp.lt.s32.totalorder %s201_s13, %s201_s13 }
 0x24f   :  { %183 = vst [vmem:[#allocation10] sm:$0xff] %v181_v5  ;;  %p314_p12 = scmp.lt.s32.totalorder %s308_s25, %s308_s25 }
 0x251   :  { %p315_p13 = por %p314_p12, %p313_p11 }
 0x253   :  { %p316_p0 = pnand %p315_p13, %p309_p10 }
 0x255   :  { %319 = shalt.err (!%p316_p0)
}
 0x256   :  { %s320_s28 = scalar_lea.hbm %s433_s3, 128 }
 0x257   :  { %p321_p1 = scmp.ne.s32.totalorder %s433_s3, %s320_s28  ;;  %p324_p2 = scmp.lt.u32.totalorder %s320_s28, %s433_s3 }
 0x259   :  { %p326_p3 = pnand %p324_p2, %p321_p1 }
 0x25b   :  { %329 = shalt.err (!%p326_p3)
}
 0x25c   :  { %203 = dma.vmem_to_hbm [thread:$0]  %s201_s13, 128, %s433_s3, [#allocation11]  }
 0x25d   :  { %334 = dma.done.wait [#allocation6], 128  }
 0x25e   :  { %335 = vsyncadd [#allocation6], 4294967168 }
 0x25f   :  { %336 = dma.done.wait [#allocation11], 128  }
 0x260   :  { %337 = vsyncadd [#allocation11], 4294967168 }
 0x261   :  { %210 = vsyncpa [#allocation5], 1 }
 0x262   :  { %211 = vsyncpa [#allocation8], 1 }
 0x263   :  { %212 = vsyncpa [#allocation6], 1 }
 0x264   :  { %213 = vsyncpa [#allocation11], 1 }

</bundles_post_ra>
